<compile_context>
chip_gen: v6e
topology: v6e:2x2x1
jax: 0.10.0
libtpu: 0.0.40
codegen_flags: <defaults>
</compile_context>

<pallas_src>
import jax
import jax.numpy as jnp
from jax.experimental import pallas as pl
from jax.experimental.pallas import tpu as pltpu

L_VALID = 468        # number of FaceMesh landmarks
L_PAD = 512          # padded to a lane multiple
HIDDEN = 128         # hidden width of the synthetic backbone
HEAD = 2 * L_PAD     # fused x|y head (lane-dense)


def _facemesh_kernel(x_ref, w1_ref, b1_ref, wh_ref, bh_ref, scale_ref,
                     lm_ref, bbox_ref, acc_ref):
    k = pl.program_id(1)

    # --- init the hidden accumulator with the bias on the first K tile ---
    @pl.when(k == 0)
    def _():
        acc_ref[...] = jnp.broadcast_to(b1_ref[...], acc_ref.shape)

    # --- backbone contraction tile: (BM, TK) @ (TK, HIDDEN) on the MXU ---
    acc_ref[...] += jnp.dot(x_ref[...], w1_ref[...],
                            preferred_element_type=jnp.float32)

    # --- epilogue on the last K tile: fused head + scaling + bbox ---
    @pl.when(k == pl.num_programs(1) - 1)
    def _():
        h = jnp.maximum(acc_ref[...], 0.0).astype(wh_ref.dtype)     # (BM, HIDDEN)
        z = jnp.dot(h, wh_ref[...], preferred_element_type=jnp.float32)
        # scale row = [width]*512 | [height]*512 -> pixel coords in one multiply
        z = jax.nn.sigmoid(z + bh_ref[...]) * scale_ref[...]        # (BM, 1024)
        lm_ref[...] = z                                             # lane-dense store

        # bbox = round([min; max]) per frame; min/max commute with round+cast,
        # so reduce the f32 rows and round/cast only the 4 results per frame.
        lx = z[:, :L_PAD]
        ly = z[:, L_PAD:]
        col = jax.lax.broadcasted_iota(jnp.int32, lx.shape, 1)
        valid = col < L_VALID
        inf = jnp.inf
        x_min = jnp.min(jnp.where(valid, lx, inf), axis=-1, keepdims=True)
        y_min = jnp.min(jnp.where(valid, ly, inf), axis=-1, keepdims=True)
        x_max = jnp.max(jnp.where(valid, lx, -inf), axis=-1, keepdims=True)
        y_max = jnp.max(jnp.where(valid, ly, -inf), axis=-1, keepdims=True)
        bbox = jnp.concatenate([x_min, y_min, x_max, y_max], axis=-1)  # (BM, 4)
        bbox_ref[...] = jnp.round(bbox).astype(jnp.int32)


def face_detector_forward(images_bgr, kernel_params, *, tk=256, bm=None):
    """images_bgr: (B, H, W, 3) uint8 frames, BGR channel order (like the numpy
    input of FaceDetector.forward).  Returns per-frame bbox (B, 2, 2) int32 and
    landmarks (B, 468, 2) float32."""
    w1, b1, wh, bh = kernel_params
    B, H, W, _ = images_bgr.shape
    k_pad = w1.shape[0]
    if bm is None:
        bm = B if B <= 64 else 64
    assert B % bm == 0 and bm % 8 == 0, "batch must tile into multiples of 8"
    assert k_pad % tk == 0

    # BGR->RGB flip and /255 are folded into w1; raw pixels only need a cast.
    x = images_bgr.reshape(B, -1).astype(jnp.bfloat16)
    if x.shape[1] != k_pad:
        x = jnp.pad(x, ((0, 0), (0, k_pad - x.shape[1])))

    scale = jnp.concatenate(
        [jnp.full((1, L_PAD), W, jnp.float32),
         jnp.full((1, L_PAD), H, jnp.float32)], axis=1)             # (1, 1024)

    grid = (B // bm, k_pad // tk)
    lm, bbox = pl.pallas_call(
        _facemesh_kernel,
        out_shape=(jax.ShapeDtypeStruct((B, HEAD), jnp.float32),
                   jax.ShapeDtypeStruct((B, 4), jnp.int32)),
        grid_spec=pltpu.PrefetchScalarGridSpec(
            num_scalar_prefetch=0,
            grid=grid,
            in_specs=[
                pl.BlockSpec((bm, tk), lambda b, k: (b, k)),         # x
                pl.BlockSpec((tk, HIDDEN), lambda b, k: (k, 0)),     # w1 (K-tiled)
                pl.BlockSpec((1, HIDDEN), lambda b, k: (0, 0)),      # b1
                pl.BlockSpec((HIDDEN, HEAD), lambda b, k: (0, 0)),   # fused head W
                pl.BlockSpec((1, HEAD), lambda b, k: (0, 0)),        # fused head b
                pl.BlockSpec((1, HEAD), lambda b, k: (0, 0)),        # width|height row
            ],
            out_specs=(
                pl.BlockSpec((bm, HEAD), lambda b, k: (b, 0)),       # landmarks
                pl.BlockSpec((bm, 4), lambda b, k: (b, 0)),          # bbox
            ),
            scratch_shapes=[pltpu.VMEM((bm, HIDDEN), jnp.float32)],  # hidden acc
        ),
        compiler_params=pltpu.CompilerParams(
            dimension_semantics=("parallel", "arbitrary"),
            vmem_limit_bytes=32 << 20),
    )(x, w1, b1, wh, bh, scale)

    # lanes 0..467 of each half are valid; padded lanes are sliced off here.
    landmarks = jnp.stack([lm[:, :L_VALID], lm[:, L_PAD:L_PAD + L_VALID]], axis=-1)
    return {"bbox": bbox.reshape(B, 2, 2), "landmarks": landmarks}


def make_model_params(key, height, width):
    """Deterministic synthetic FaceMesh-backbone weights in the 'model' form
    (RGB image normalized to [0,1], separate x/y landmark heads, f32)."""
    in_dim = height * width * 3
    k1, k2, k3 = jax.random.split(key, 3)
    w1 = 0.05 * jax.random.normal(k1, (in_dim, HIDDEN), jnp.float32)
    b1 = jnp.zeros((1, HIDDEN), jnp.float32)
    wx = 0.10 * jax.random.normal(k2, (HIDDEN, L_PAD), jnp.float32)
    bx = jnp.zeros((1, L_PAD), jnp.float32)
    wy = 0.10 * jax.random.normal(k3, (HIDDEN, L_PAD), jnp.float32)
    by = jnp.zeros((1, L_PAD), jnp.float32)
    return (w1, b1, wx, bx, wy, by)


def prepare_kernel_params(model_params, height, width, *, tk=256):
    """Fold BGR->RGB flip + /255 into w1, pad K to a tile multiple, fuse the x/y
    heads into one lane-dense (HIDDEN, 2*L_PAD) weight, cast weights to bf16."""
    w1, b1, wx, bx, wy, by = model_params
    hw = height * width
    # raw flattened-BGR row j (channel c) must hit the RGB w1 row of channel 2-c,
    # pre-scaled by 1/255 so the kernel consumes raw pixel values.
    w1_folded = (w1.reshape(hw, 3, HIDDEN)[:, ::-1, :].reshape(hw * 3, HIDDEN)
                 * (1.0 / 255.0))
    k_pad = ((hw * 3 + tk - 1) // tk) * tk
    if k_pad != hw * 3:
        w1_folded = jnp.pad(w1_folded, ((0, k_pad - hw * 3), (0, 0)))
    w_head = jnp.concatenate([wx, wy], axis=1)        # (HIDDEN, 1024)
    b_head = jnp.concatenate([bx, by], axis=1)        # (1, 1024)
    return (w1_folded.astype(jnp.bfloat16), b1,
            w_head.astype(jnp.bfloat16), b_head.astype(jnp.float32))


def _reference(images_bgr, model_params):
    """Plain-JAX reference of the original forward semantics (per frame)."""
    B, H, W, _ = images_bgr.shape
    rgb = images_bgr[:, :, :, ::-1].astype(jnp.float32) / 255.0
    x = rgb.reshape(B, -1)
    w1, b1, wx, bx, wy, by = model_params
    hid = jnp.maximum(x @ w1 + b1, 0.0)
    lx = jax.nn.sigmoid(hid @ wx + bx)[:, :L_VALID] * W
    ly = jax.nn.sigmoid(hid @ wy + by)[:, :L_VALID] * H
    landmarks = jnp.stack([lx, ly], axis=-1)                         # (B, 468, 2)
    bbox = jnp.round(jnp.stack([landmarks.min(axis=1),
                                landmarks.max(axis=1)], axis=1)).astype(jnp.int32)
    return bbox, landmarks


# TODO(synk): the pretrained MediaPipe FaceMesh graph (and the `eyes_centers`
# camera projection helper) have no Pallas equivalent; a synthetic deterministic
# landmark-regression backbone with the same I/O contract is used instead.

if __name__ == "__main__":
    B, H, W = 8, 16, 16          # small demo shapes; TK scales up for real images
    TK = 256
    key = jax.random.PRNGKey(0)
    k_img, k_par = jax.random.split(key)

    # deterministic uint8 BGR frames (B, H, W, 3)
    images = jax.random.randint(k_img, (B, H, W, 3), 0, 256,
                                dtype=jnp.int32).astype(jnp.uint8)
    model_params = make_model_params(k_par, H, W)
    kernel_params = prepare_kernel_params(model_params, H, W, tk=TK)

    out = face_detector_forward(images, kernel_params, tk=TK)
    jax.block_until_ready(out)

    bbox_ref, lm_ref = _reference(images, model_params)
    assert out["landmarks"].shape == (B, L_VALID, 2)
    assert out["bbox"].shape == (B, 2, 2) and out["bbox"].dtype == jnp.int32
    assert jnp.allclose(out["landmarks"], lm_ref, rtol=1e-2, atol=5e-2)
    assert int(jnp.max(jnp.abs(out["bbox"] - bbox_ref))) <= 1

    print("KERNEL_OK")
</pallas_src>

<mosaic_0001>
module attributes {stable_mosaic.version = 11 : i64} {
  func.func @_facemesh_kernel(%arg0: i32, %arg1: i32, %arg2: memref<8x256xbf16, #tpu.memory_space<vmem>>, %arg3: memref<256x128xbf16, #tpu.memory_space<vmem>>, %arg4: memref<1x128xf32, #tpu.memory_space<vmem>>, %arg5: memref<128x1024xbf16, #tpu.memory_space<vmem>>, %arg6: memref<1x1024xf32, #tpu.memory_space<vmem>>, %arg7: memref<1x1024xf32, #tpu.memory_space<vmem>>, %arg8: memref<8x1024xf32, #tpu.memory_space<vmem>>, %arg9: memref<8x4xi32, #tpu.memory_space<vmem>>, %arg10: memref<8x128xf32, #tpu.memory_space<vmem>>) attributes {dimension_semantics = [#tpu.dimension_semantics<parallel>, #tpu.dimension_semantics<arbitrary>], iteration_bounds = array<i64: 1, 3>, scalar_prefetch = 0 : i64, scratch_operands = 1 : i64, tpu.core_type = #tpu.core_type<tc>, window_params = [{transform_indices = @transform_0, window_bounds = array<i64: 8, 256>}, {transform_indices = @transform_1, window_bounds = array<i64: 256, 128>}, {pipeline_mode = #tpu.pipeline_mode<synchronous>, transform_indices = @transform_2, window_bounds = array<i64: 1, 128>}, {pipeline_mode = #tpu.pipeline_mode<synchronous>, transform_indices = @transform_3, window_bounds = array<i64: 128, 1024>}, {pipeline_mode = #tpu.pipeline_mode<synchronous>, transform_indices = @transform_4, window_bounds = array<i64: 1, 1024>}, {pipeline_mode = #tpu.pipeline_mode<synchronous>, transform_indices = @transform_5, window_bounds = array<i64: 1, 1024>}, {transform_indices = @transform_6, window_bounds = array<i64: 8, 1024>}, {transform_indices = @transform_7, window_bounds = array<i64: 8, 4>}]} {
    %c0_i32 = arith.constant 0 : i32
    %0 = arith.cmpi eq, %arg1, %c0_i32 : i32
    %1 = arith.extui %0 : i1 to i32
    %c0_i32_0 = arith.constant 0 : i32
    %2 = arith.cmpi ne, %1, %c0_i32_0 : i32
    scf.if %2 {
      %c0_9 = arith.constant 0 : index
      %c0_10 = arith.constant 0 : index
      %12 = vector.load %arg4[%c0_9, %c0_10] : memref<1x128xf32, #tpu.memory_space<vmem>>, vector<1x128xf32>
      %13 = vector.shape_cast %12 : vector<1x128xf32> to vector<1x128xf32>
      %14 = vector.broadcast %13 : vector<1x128xf32> to vector<8x128xf32>
      %c0_11 = arith.constant 0 : index
      %c0_12 = arith.constant 0 : index
      %15 = vector.load %arg10[%c0_11, %c0_12] : memref<8x128xf32, #tpu.memory_space<vmem>>, vector<8x128xf32>
      tpu.vector_store %arg10[%c0_11, %c0_12], %14 {strides = array<i32>} : memref<8x128xf32, #tpu.memory_space<vmem>>, vector<8x128xf32>,
    } else {
    }
    %c0 = arith.constant 0 : index
    %c0_1 = arith.constant 0 : index
    %3 = vector.load %arg10[%c0, %c0_1] : memref<8x128xf32, #tpu.memory_space<vmem>>, vector<8x128xf32>
    %c0_2 = arith.constant 0 : index
    %c0_3 = arith.constant 0 : index
    %4 = vector.load %arg2[%c0_2, %c0_3] : memref<8x256xbf16, #tpu.memory_space<vmem>>, vector<8x256xbf16>
    %c0_4 = arith.constant 0 : index
    %c0_5 = arith.constant 0 : index
    %5 = vector.load %arg3[%c0_4, %c0_5] : memref<256x128xbf16, #tpu.memory_space<vmem>>, vector<256x128xbf16>
    %cst = arith.constant dense<0.000000e+00> : vector<8x128xf32>
    %6 = tpu.matmul %4, %5, %cst {dimension_numbers = #tpu.dot_dimension_numbers<[1], [0], [0], [1], [0, 0, 1, 1], [], []>} : vector<8x256xbf16>, vector<256x128xbf16>, vector<8x128xf32> -> vector<8x128xf32>
    %7 = arith.addf %3, %6 : vector<8x128xf32>
    %c0_6 = arith.constant 0 : index
    %c0_7 = arith.constant 0 : index
    %8 = vector.load %arg10[%c0_6, %c0_7] : memref<8x128xf32, #tpu.memory_space<vmem>>, vector<8x128xf32>
    tpu.vector_store %arg10[%c0_6, %c0_7], %7 {strides = array<i32>} : memref<8x128xf32, #tpu.memory_space<vmem>>, vector<8x128xf32>,
    %c2_i32 = arith.constant 2 : i32
    %9 = arith.cmpi eq, %arg1, %c2_i32 : i32
    %10 = arith.extui %9 : i1 to i32
    %c0_i32_8 = arith.constant 0 : i32
    %11 = arith.cmpi ne, %10, %c0_i32_8 : i32
    scf.if %11 {
      %c0_9 = arith.constant 0 : index
      %c0_10 = arith.constant 0 : index
      %12 = vector.load %arg10[%c0_9, %c0_10] : memref<8x128xf32, #tpu.memory_space<vmem>>, vector<8x128xf32>
      %cst_11 = arith.constant 0.000000e+00 : f32
      %13 = vector.broadcast %cst_11 : f32 to vector<8x128xf32>
      %14 = arith.maximumf %12, %13 : vector<8x128xf32>
      %15 = arith.truncf %14 : vector<8x128xf32> to vector<8x128xbf16>
      %c0_12 = arith.constant 0 : index
      %c0_13 = arith.constant 0 : index
      %16 = vector.load %arg5[%c0_12, %c0_13] : memref<128x1024xbf16, #tpu.memory_space<vmem>>, vector<128x1024xbf16>
      %cst_14 = arith.constant dense<0.000000e+00> : vector<8x1024xf32>
      %17 = tpu.matmul %15, %16, %cst_14 {dimension_numbers = #tpu.dot_dimension_numbers<[1], [0], [0], [1], [0, 0, 1, 1], [], []>} : vector<8x128xbf16>, vector<128x1024xbf16>, vector<8x1024xf32> -> vector<8x1024xf32>
      %c0_15 = arith.constant 0 : index
      %c0_16 = arith.constant 0 : index
      %18 = vector.load %arg6[%c0_15, %c0_16] : memref<1x1024xf32, #tpu.memory_space<vmem>>, vector<1x1024xf32>
      %19 = vector.broadcast %18 : vector<1x1024xf32> to vector<8x1024xf32>
      %20 = arith.addf %17, %19 : vector<8x1024xf32>
      %21 = arith.negf %20 : vector<8x1024xf32>
      %22 = math.exp %21 : vector<8x1024xf32>
      %cst_17 = arith.constant 1.000000e+00 : f32
      %23 = vector.broadcast %cst_17 : f32 to vector<8x1024xf32>
      %24 = arith.addf %23, %22 : vector<8x1024xf32>
      %25 = arith.divf %23, %24 : vector<8x1024xf32>
      %c0_18 = arith.constant 0 : index
      %c0_19 = arith.constant 0 : index
      %26 = vector.load %arg7[%c0_18, %c0_19] : memref<1x1024xf32, #tpu.memory_space<vmem>>, vector<1x1024xf32>
      %27 = vector.broadcast %26 : vector<1x1024xf32> to vector<8x1024xf32>
      %28 = arith.mulf %25, %27 : vector<8x1024xf32>
      %c0_20 = arith.constant 0 : index
      %c0_21 = arith.constant 0 : index
      %29 = vector.load %arg8[%c0_20, %c0_21] : memref<8x1024xf32, #tpu.memory_space<vmem>>, vector<8x1024xf32>
      tpu.vector_store %arg8[%c0_20, %c0_21], %28 {strides = array<i32>} : memref<8x1024xf32, #tpu.memory_space<vmem>>, vector<8x1024xf32>,
      %30 = vector.extract_strided_slice %28 {offsets = [0, 0], sizes = [8, 512], strides = [1, 1]} : vector<8x1024xf32> to vector<8x512xf32>
      %31 = vector.extract_strided_slice %28 {offsets = [0, 512], sizes = [8, 512], strides = [1, 1]} : vector<8x1024xf32> to vector<8x512xf32>
      %32 = tpu.iota {dimensions = array<i32: 1>} : vector<8x512xi32>
      %c468_i32 = arith.constant 468 : i32
      %33 = vector.broadcast %c468_i32 : i32 to vector<8x512xi32>
      %34 = arith.cmpi slt, %32, %33 : vector<8x512xi32>
      %cst_22 = arith.constant 0x7F800000 : f32
      %35 = vector.broadcast %cst_22 : f32 to vector<8x512xf32>
      %36 = arith.select %34, %30, %35 : vector<8x512xi1>, vector<8x512xf32>
      %cst_23 = arith.constant dense<0x7F800000> : vector<8xf32>
      %37 = vector.multi_reduction <minimumf>, %36, %cst_23 [1] : vector<8x512xf32> to vector<8xf32>
      %38 = vector.shape_cast %37 : vector<8xf32> to vector<8x1xf32>
      %cst_24 = arith.constant 0x7F800000 : f32
      %39 = vector.broadcast %cst_24 : f32 to vector<8x512xf32>
      %40 = arith.select %34, %31, %39 : vector<8x512xi1>, vector<8x512xf32>
      %cst_25 = arith.constant dense<0x7F800000> : vector<8xf32>
      %41 = vector.multi_reduction <minimumf>, %40, %cst_25 [1] : vector<8x512xf32> to vector<8xf32>
      %42 = vector.shape_cast %41 : vector<8xf32> to vector<8x1xf32>
      %cst_26 = arith.constant 0xFF800000 : f32
      %43 = vector.broadcast %cst_26 : f32 to vector<8x512xf32>
      %44 = arith.select %34, %30, %43 : vector<8x512xi1>, vector<8x512xf32>
      %cst_27 = arith.constant dense<0xFF800000> : vector<8xf32>
      %45 = vector.multi_reduction <maximumf>, %44, %cst_27 [1] : vector<8x512xf32> to vector<8xf32>
      %46 = vector.shape_cast %45 : vector<8xf32> to vector<8x1xf32>
      %cst_28 = arith.constant 0xFF800000 : f32
      %47 = vector.broadcast %cst_28 : f32 to vector<8x512xf32>
      %48 = arith.select %34, %31, %47 : vector<8x512xi1>, vector<8x512xf32>
      %cst_29 = arith.constant dense<0xFF800000> : vector<8xf32>
      %49 = vector.multi_reduction <maximumf>, %48, %cst_29 [1] : vector<8x512xf32> to vector<8xf32>
      %50 = vector.shape_cast %49 : vector<8xf32> to vector<8x1xf32>
      %51 = tpu.concatenate %38, %42, %46, %50 in 1 : vector<8x1xf32>, vector<8x1xf32>, vector<8x1xf32>, vector<8x1xf32> -> vector<8x4xf32>
      %52 = math.roundeven %51 : vector<8x4xf32>
      %53 = arith.fptosi %52 : vector<8x4xf32> to vector<8x4xi32>
      %c0_30 = arith.constant 0 : index
      %c0_31 = arith.constant 0 : index
      %54 = vector.load %arg9[%c0_30, %c0_31] : memref<8x4xi32, #tpu.memory_space<vmem>>, vector<8x4xi32>
      tpu.vector_store %arg9[%c0_30, %c0_31], %53 {strides = array<i32>} : memref<8x4xi32, #tpu.memory_space<vmem>>, vector<8x4xi32>,
    } else {
    }
    return
  }
  func.func @transform_0(%arg0: i32, %arg1: i32) -> (i32, i32) {
    %c0_i32 = arith.constant 0 : i32
    return %arg0, %arg1 : i32, i32
  }
  func.func @transform_1(%arg0: i32, %arg1: i32) -> (i32, i32) {
    %c0_i32 = arith.constant 0 : i32
    %c0_i32_0 = arith.constant 0 : i32
    return %arg1, %c0_i32 : i32, i32
  }
  func.func @transform_2(%arg0: i32, %arg1: i32) -> (i32, i32) {
    %c0_i32 = arith.constant 0 : i32
    %c0_i32_0 = arith.constant 0 : i32
    %c0_i32_1 = arith.constant 0 : i32
    return %c0_i32, %c0_i32_0 : i32, i32
  }
  func.func @transform_3(%arg0: i32, %arg1: i32) -> (i32, i32) {
    %c0_i32 = arith.constant 0 : i32
    %c0_i32_0 = arith.constant 0 : i32
    %c0_i32_1 = arith.constant 0 : i32
    return %c0_i32, %c0_i32_0 : i32, i32
  }
  func.func @transform_4(%arg0: i32, %arg1: i32) -> (i32, i32) {
    %c0_i32 = arith.constant 0 : i32
    %c0_i32_0 = arith.constant 0 : i32
    %c0_i32_1 = arith.constant 0 : i32
    return %c0_i32, %c0_i32_0 : i32, i32
  }
  func.func @transform_5(%arg0: i32, %arg1: i32) -> (i32, i32) {
    %c0_i32 = arith.constant 0 : i32
    %c0_i32_0 = arith.constant 0 : i32
    %c0_i32_1 = arith.constant 0 : i32
    return %c0_i32, %c0_i32_0 : i32, i32
  }
  func.func @transform_6(%arg0: i32, %arg1: i32) -> (i32, i32) {
    %c0_i32 = arith.constant 0 : i32
    %c0_i32_0 = arith.constant 0 : i32
    return %arg0, %c0_i32 : i32, i32
  }
  func.func @transform_7(%arg0: i32, %arg1: i32) -> (i32, i32) {
    %c0_i32 = arith.constant 0 : i32
    %c0_i32_0 = arith.constant 0 : i32
    return %arg0, %c0_i32 : i32, i32
  }
}

</mosaic_0001>

<bundles_post_ra>
// kernel: tpu_custom_call.1
= control target key start
LH: loop header
LB: loop body
LE: loop exit
PB: predicated region body
PF: predicated region fallthrough
CT: control target
= control target key end

     0   :  { %s2267_s0 = inlined_call_operand.hbm [shape: bf16[8,768], index: 0, kind: input, shape index: {}]   ;;  %s2268_s1 = inlined_call_operand.hbm [shape: bf16[768,128], index: 1, kind: input, shape index: {}]   ;;  %s2269_s2 = inlined_call_operand.vmem [shape: f32[1,128], index: 2, kind: input, shape index: {}]   ;;  %s2270_s3 = inlined_call_operand.hbm [shape: bf16[128,1024], index: 3, kind: input, shape index: {}]   ;;  %s2271_s4 = inlined_call_operand.hbm [shape: f32[1,1024], index: 4, kind: input, shape index: {}]   ;;  %s2272_s5 = inlined_call_operand.vmem [shape: f32[1,1024], index: 5, kind: input, shape index: {}]   ;;  %s2273_s6 = inlined_call_operand.hbm [shape: f32[8,1024], index: 6, kind: output, shape index: {0}]   ;;  %s2274_s7 = inlined_call_operand.vmem [shape: s32[8,4], index: 7, kind: output, shape index: {1}]  }
   0x1   :  { %2277 = sst [smem:[#allocation18_spill]] %s2267_s0 }
   0x2   :  { %2278 = sst [smem:[#allocation19_spill]] %s2270_s3 }
   0x3   :  { %2279 = sst [smem:[#allocation20_spill]] %s2271_s4 }
   0x4   :  { %13 = vsyncpa [#allocation4], 0 }
   0x5   :  { %15 = vsyncpa [#allocation4 + $0x1], 0 }
   0x6   :  { %16 = vsyncpa [#allocation7], 0 }
   0x7   :  { %18 = vsyncpa [#allocation7 + $0x1], 0 }
   0x8   :  { %19 = vsyncpa [#allocation10], 0 }
   0x9   :  { %20 = vsyncpa [#allocation5], 0  ;;  %s2011_s24 = smov 0   ;;  %s2013_s25 = smov 0  }
   0xa   :  { %s2015_s26 = smov 0   ;;  %s2017_s27 = smov 0  }
   0xb   :  { %s2019_s28 = smov 0   ;;  %s2021_s29 = smov 0  }
   0xc LB: > { %s2040_s30 = sadd.s32 4294967295, %s1959_s29   ;;  %p60_p0 = scmp.ne.s32.totalorder %s1943_s25, %s1939_s24  ;;  %s1959_s29 = sphi %s2021_s29, %s26_s29   ;;  %s1955_s28 = sphi %s2019_s28, %s2297_s28   ;;  %s1951_s27 = sphi %s2017_s27, %s2296_s27   ;;  %s1947_s26 = sphi %s2015_s26, %s2295_s26   ;;  %s1943_s25 = sphi %s2013_s25, %s2294_s25   ;;  %s1939_s24 = sphi %s2011_s24, %s2293_s24  }
   0xd   : > { %p2275_p1 = scmp.eq.s32.totalorder %s2040_s30, 0  ;;  %p1478_p2 = scmp.ge.s32.totalorder %s1959_s29, 1 }
   0xe   : > { %p233_p3 = scmp.lt.s32.totalorder %s1959_s29, 4  ;;  %s1961_s10 = smov [#allocation8]  }
   0xf   : > { %p2048_p4 = por %p2275_p1, %p60_p0  ;;  %s248_s11 = sshll.u32 %s1961_s10, 4  ;;  %s249_s11 = int_to_ptr.vmem [resolvable:$true] %s248_s11 }
  0x10   : > { %p2052_p5 = pnand %p1478_p2, %p233_p3  ;;  %s1962_s13 = smov [#allocation9]  }
  0x11   : > { %s262_s14 = sshll.u32 %s1962_s13, 4  ;;  %s1772_s15 = scalar_lea.vmem %s249_s11, 8192  ;;  %s263_s14 = int_to_ptr.vmem [resolvable:$true] %s262_s14 }
  0x12   : > { %p1634_p6 = pneg %p2052_p5  ;;  %p1773_p9 = scmp.ne.s32.totalorder %s249_s11, %s1772_s15 }
  0x13   : > { %p1780_p12 = scmp.lt.s32.totalorder %s249_s11, %s249_s11  ;;  %p1781_p13 = scmp.lt.s32.totalorder %s1772_s15, %s1772_s15 }
  0x14   : > { %p2060_p7 = pnand %p1634_p6, %p2275_p1 }
  0x15   : > { %p1782_p0 = por %p1781_p13, %p1780_p12 }
  0x16   : > { %p1763_p8 = pneg %p2060_p7 }
  0x18   : > { %p1775_p10 = pnand %p1773_p9, %p1763_p8 }
  0x1a   : > { %p1776_p11 = pneg %p1775_p10 }
  0x1c   : > { %p1783_p2 = pnand %p1782_p0, %p1776_p11 }
  0x1e   : > { %1786 = shalt.err (!%p1783_p2)
}
  0x1f   : > { %s1963_s16 = smov 512   ;;  %s1964_s17 = smov 32  }
  0x20   : > { %s2283_s3 = sld [smem:[#allocation19_spill]]  ;;  %s1798_s20 = scalar_lea.vmem %s263_s14, 128 }
  0x21   : > { %p1799_p3 = scmp.ne.s32.totalorder %s263_s14, %s1798_s20  ;;  %p1806_p10 = scmp.lt.s32.totalorder %s263_s14, %s263_s14 }
  0x22   : > { %p1807_p1 = scmp.lt.s32.totalorder %s1798_s20, %s1798_s20 }
  0x23   : > { %p1801_p6 = pnand %p1799_p3, %p1763_p8 }
  0x24   : > { %p1808_p12 = por %p1807_p1, %p1806_p10 }
  0x25   : > { %p1802_p9 = pneg %p1801_p6 }
  0x26   : > { %1637 = dma.hbm_to_vmem [thread:$0]  (!%p2060_p7), %s2283_s3, 8192, %s249_s11, [#allocation7], %s1963_s16, %s1963_s16, %s1964_s17  }
  0x27   : > { %p1809_p11 = pnand %p1808_p12, %p1802_p9 }
  0x29   : > { %1812 = shalt.err (!%p1809_p11)
}
  0x2a   : > { %s2284_s4 = sld [smem:[#allocation20_spill]]  ;;  %s35_s23 = sadd.s32 1, %s1955_s28 }
  0x2b   : > { %s47_s24 = sadd.s32 1, %s1947_s26  ;;  %p36_p1 = scmp.ge.s32.totalorder %s35_s23, 3 }
  0x2c   : > { %p54_p8 = scmp.ne.s32.totalorder %s1947_s26, %s1943_s25  ;;  %p55_p13 = scmp.eq.s32.totalorder %s1959_s29, 0 }
  0x2d   : > { %p1650_p0 = scmp.lt.s32.totalorder %s1959_s29, 3  ;;  %s2299_s23 = smov (%p36_p1, %s35_s23), 0 }
  0x2e   : > { %2285 = sst [smem:[#allocation17_spill]] %s2299_s23  ;;  %p56_p2 = por %p55_p13, %p54_p8 }
  0x2f   : > { %s2091_s10 = sand.u32 1, %s1947_s26   ;;  %s43_s11 = ssub.s32 %s1955_s28, %s2299_s23 }
  0x30   : > { %1640 = dma.hbm_to_vmem [thread:$0]  (!%p2060_p7), %s2284_s4, 128, %s263_s14, [#allocation10]  }
  0x31   : > { %p45_p3 = scmp.eq.s32.totalorder %s43_s11, 0  ;;  %s1482_s12 = sshll.u32 %s2091_s10, 3 }
  0x32   : > { %s1591_s13 = sshll.u32 %s1955_s28, 7  ;;  %s2286_s0 = sld [smem:[#allocation18_spill]] }
  0x33   : > { %s2098_s14 = scalar_select %p45_p3, %s1947_s26, %s47_s24  }
  0x34   : > { %s280_s18 = scalar_lea.vmem [#allocation3], %s1482_s12  ;;  %p2105_p7 = pnand %p1650_p0, %p56_p2 }
  0x35   : > { %s290_s19 = sshll.u32 %s280_s18, 4  ;;  %s1485_s21 = sshll.u32 %s2091_s10, 7  ;;  %s291_s19 = int_to_ptr.vmem [resolvable:$true] %s290_s19 }
  0x36   : > { %s1592_s22 = sshll.u32 %s1955_s28, 11  ;;  %s277_s11 = scalar_lea.sflag [#allocation4], %s2091_s10 }
  0x37   : > { %p1815_p6 = pneg %p2105_p7  ;;  %s1826_s24 = scalar_lea.vmem %s291_s19, 128 }
  0x38   : > { %s288_s17 = scalar_lea.hbm %s2286_s0, %s1591_s13  ;;  %p1827_p9 = scmp.ne.s32.totalorder %s291_s19, %s1826_s24 }
  0x39   : > { %s1965_s12 = smov [#allocation3]  }
  0x3a   : > { %p1829_p10 = pnand %p1827_p9, %p1815_p6  ;;  %s1831_s13 = sshll.u32 %s1965_s12, 4  ;;  %s1832_s13 = int_to_ptr.vmem [resolvable:$false] %s1831_s13 }
  0x3b   : > { %s1833_s15 = scalar_lea.vmem %s1832_s13, 256  ;;  %p1834_p11 = scmp.lt.s32.totalorder %s291_s19, %s1832_s13 }
  0x3c   : > { %p1830_p12 = pneg %p1829_p10  ;;  %p1835_p1 = scmp.lt.s32.totalorder %s1833_s15, %s1826_s24 }
  0x3e   : > { %p1836_p8 = por %p1835_p1, %p1834_p11 }
  0x40   : > { %p1837_p13 = pnand %p1836_p8, %p1830_p12 }
  0x42   : > { %1840 = shalt.err (!%p1837_p13)
}
  0x43   : > { %1644 = dma.hbm_to_vmem [thread:$0]  (!%p2105_p7), %s288_s17, 128, %s291_s19, %s277_s11  }
  0x44   : > { %s301_s10 = scalar_lea.vmem [#allocation6], %s1485_s21  ;;  %s297_s18 = sand.u32 1, %s1959_s29  }
  0x45   : > { %s308_s16 = sshll.u32 %s301_s10, 4  ;;  %s307_s12 = scalar_lea.hbm %s2268_s1, %s1592_s22  ;;  %s309_s16 = int_to_ptr.vmem [resolvable:$true] %s308_s16 }
  0x46   : > { %s298_s4 = scalar_lea.sflag [#allocation7], %s297_s18  ;;  %s1854_s23 = scalar_lea.vmem %s309_s16, 2048 }
  0x47   : > { %p1855_p0 = scmp.ne.s32.totalorder %s309_s16, %s1854_s23  ;;  %s1966_s24 = smov [#allocation6]  }
  0x48   : > { %s1859_s13 = sshll.u32 %s1966_s24, 4  ;;  %s1860_s13 = int_to_ptr.vmem [resolvable:$false] %s1859_s13 }
  0x49   : > { %p1857_p2 = pnand %p1855_p0, %p1815_p6  ;;  %s1861_s15 = scalar_lea.vmem %s1860_s13, 4096 }
  0x4a   : > { %p1862_p9 = scmp.lt.s32.totalorder %s309_s16, %s1860_s13  ;;  %p1863_p10 = scmp.lt.s32.totalorder %s1861_s15, %s1854_s23 }
  0x4b   : > { %p1858_p3 = pneg %p1857_p2 }
  0x4c   : > { %p1864_p12 = por %p1863_p10, %p1862_p9 }
  0x4e   : > { %p1865_p11 = pnand %p1864_p12, %p1858_p3 }
  0x50   : > { %1868 = shalt.err (!%p1865_p11)
}
  0x51   : > { %s1967_s17 = smov 64   ;;  %s1968_s0 = smov 4  }
  0x52   : > { %1647 = dma.hbm_to_vmem [thread:$0]  (!%p2105_p7), %s307_s12, 2048, %s309_s16, %s298_s4, %s1967_s17, %s1967_s17, %s1968_s0  }
  0x53   : > { %320 = sbr.rel (%p2052_p5) target bundleno = 804 (0x324), region = 44  ;;  %s322_s3 = sand.u32 (!%p2052_p5), 1, %s1943_s25  }
  0x54   : > { %s1489_s19 = sshll.u32 (!%p2052_p5), %s322_s3, 3  ;;  %s323_s21 = scalar_lea.sflag (!%p2052_p5), [#allocation4], %s322_s3 }
  0x55   : > { %s2131_s22 = scalar_lea.vmem (!%p2052_p5), [#allocation3], %s1489_s19 }
  0x58   : > { %1918 = dma.done.wait (%p2048_p4), %s323_s21, 128  }
  0x59   : > { %1920 = vsyncadd (%p2048_p4), %s323_s21, 4294967168  ;;  %s331_s23 = sand.u32 1, %s2040_s30   ;;  %s1490_s20 = sshll.u32 %s322_s3, 7 }
  0x5a   : > { %s332_s4 = scalar_lea.sflag [#allocation7], %s331_s23  ;;  %s2138_s11 = scalar_lea.vmem [#allocation6], %s1490_s20 }
  0x5b   : > { %1922 = dma.done.wait (%p2048_p4), %s332_s4, 2048  }
  0x5c   : > { %1924 = vsyncadd (%p2048_p4), %s332_s4, 4294965248  ;;  %p2288_p5 = scmp.eq.s32.totalorder %s2040_s30, 0 }
  0x5e   : > { %1926 = dma.done.wait (%p2288_p5), [#allocation7], 8192   ;;  %p2289_p7 = pmov %p2288_p5 }
  0x5f   : > { %p2290_p6 = pmov %p2288_p5 }
  0x60   : > { %1928 = vsyncadd (%p2289_p7), [#allocation7], 4294959104 }
  0x61   : > { %1930 = dma.done.wait (%p2290_p6), [#allocation10], 128   ;;  %p2291_p1 = pmov %p2288_p5 }
  0x62   : > { %p1493_p8 = scmp.ne.s32.totalorder %s1951_s27, 0 }
  0x63   : > { %1932 = vsyncadd (%p2291_p1), [#allocation10], 4294967168 }
  0x64   : > { %388 = sbr.rel (%p1493_p8) target bundleno = 107 (0x6b), region = 64 }
  0x69   : > { %v1494_v0 = vld [vmem:[%s2269_s2] ss:$0 sm:$0xff] }
  0x6a   : > { %396 = vst [vmem:[#allocation2] sm:$0xff] %v1494_v0 }
  0x6b PF: > { %v1711_v1 = vld [vmem:[%s2138_s11 + $0x78] sm:$0xff]   ;;  %v1713_v3 = vld [vmem:[%s2138_s11 + $0x70] sm:$0xff]   ;;  %v1715_v5 = vld [vmem:[%s2138_s11 + $0x68] sm:$0xff]   ;;  %p1513_p4 = scmp.ne.s32.totalorder %s1951_s27, 2 }
  0x6c   : > { %v1712_v2 = vld [vmem:[%s2138_s11 + $0x38] sm:$0xff]   ;;  %1593 = vmatprep.subr.bf16.mxu0 %v1711_v1  ;;  %v1714_v4 = vld [vmem:[%s2138_s11 + $0x30] sm:$0xff]   ;;  %v1716_v6 = vld [vmem:[%s2138_s11 + $0x28] sm:$0xff]  }
  0x6d   : > { %1594 = vmatpush3.bf16.msra.mxu0 %v1712_v2  ;;  %v1717_v7 = vld [vmem:[%s2138_s11 + $0x60] sm:$0xff]   ;;  %v1719_v9 = vld [vmem:[%s2138_s11 + $0x58] sm:$0xff]   ;;  %v1721_v11 = vld [vmem:[%s2138_s11 + $0x50] sm:$0xff]  }
  0x6e   : > { %1595 = vmatprep.subr.bf16.mxu0 %v1713_v3  ;;  %v1718_v8 = vld [vmem:[%s2138_s11 + $0x20] sm:$0xff]   ;;  %v1720_v10 = vld [vmem:[%s2138_s11 + $0x18] sm:$0xff]   ;;  %v1722_v14 = vld [vmem:[%s2138_s11 + $0x10] sm:$0xff]  }
  0x6f   : > { %v398_v12 = vld [vmem:[%s2131_s22] sm:$0xff]  ;;  %v1723_v15 = vld [vmem:[%s2138_s11 + $0x48] sm:$0xff]   ;;  %v1725_v17 = vld [vmem:[%s2138_s11 + $0x40] sm:$0xff]  }
  0x70   : > { %v1496_v13 = vcombine.high %v398_v12, %v398_v12  ;;  %v1724_v16 = vld [vmem:[%s2138_s11 + $0x8] sm:$0xff]   ;;  %v1726_v18 = vld [vmem:[%s2138_s11] sm:$0xff]   ;;  %v1495_v19 = vcombine.low %v398_v12, %v398_v12 }
  0x71   : > { %1596 = vmatpush3.bf16.msra.mxu0 %v1714_v4  ;;  %v397_v21 = vld [vmem:[#allocation2] sm:$0xff] }
  0x72   : > { %1597 = vmatprep.subr.bf16.mxu0 %v1715_v5  ;;  %566 = vmatprep.mubr.bf16.mxu0 %v1496_v13 }
  0x75   : > { %1598 = vmatpush3.bf16.msra.mxu0 %v1716_v6 }
  0x76   : > { %1599 = vmatprep.subr.bf16.mxu0 %v1717_v7 }
  0x79   : > { %1600 = vmatpush3.bf16.msra.mxu0 %v1718_v8 }
  0x7a   : > { %1601 = vmatprep.subr.bf16.mxu0 %v1719_v9 }
  0x7d   : > { %1602 = vmatpush3.bf16.msra.mxu0 %v1720_v10 }
  0x7e   : > { %1603 = vmatprep.subr.bf16.mxu0 %v1721_v11 }
  0x81   : > { %1604 = vmatpush3.bf16.msra.mxu0 %v1722_v14 }
  0x82   : > { %1605 = vmatprep.subr.bf16.mxu0 %v1723_v15 }
  0x85   : > { %1606 = vmatpush3.bf16.msra.mxu0 %v1724_v16 }
  0x86   : > { %1607 = vmatprep.subr.bf16.mxu0 %v1725_v17 }
  0x89   : > { %1608 = vmatpush3.bf16.msra.mxu0 %v1726_v18 }
  0x8c   : > { %567 = vmatmul.mubr.bf16.vlgmr.msra.gmra.mxu0 %v1495_v19 }
 0x14c   : > { %v1609_v20 = vpop.f32.mrf.mxu0 }
 0x14e   : > { %v1610_v22 = vpop.f32.mrf.mxu0 }
 0x14f   : > { %v1611_v23 = vadd.f32 %v1610_v22, %v1609_v20  ;;  %579 = sbr.rel (%p1513_p4) target bundleno = 789 (0x315), region = 68 }
 0x150   : > { %v1612_v24 = vpop.f32.mrf.mxu0 }
 0x151   : > { %v574_v25 = vadd.f32 %v1611_v23, %v397_v21 }
 0x152   : > { %v1613_v26 = vpop.f32.mrf.mxu0 }
 0x153   : > { %575 = vst [vmem:[#allocation2] sm:$0xff] %v574_v25 }
 0x154   : > { %v639_v27 = vld [vmem:[#allocation8 + $0x1c0] sm:$0xff]  ;;  %v640_v29 = vld [vmem:[#allocation8 + $0x1c8] sm:$0xff]  ;;  %v1969_v35 = vmov 0   ;;  %vm1324_vm1 = vcmask 7168   ;;  %vm1326_vm2 = vcmask 15360   ;;  %vm1328_vm3 = vcmask 23552  }
 0x155   : > { %v643_v28 = vld [vmem:[#allocation8 + $0x1e0] sm:$0xff]  ;;  %v644_v31 = vld [vmem:[#allocation8 + $0x1e8] sm:$0xff]  ;;  %1041 = vmatprep.mubr.bf16.mxu0 %v1969_v35  ;;  %1082 = vmatprep.mubr.bf16.mxu1 %v1969_v35  ;;  %vm1331_vm4 = vcmask 31744  }
 0x156   : > { %v1571_v30 = vcombine.high %v639_v27, %v643_v28  ;;  %v1570_v32 = vcombine.low %v639_v27, %v643_v28  ;;  %v631_v33 = vld [vmem:[#allocation8 + $0x180] sm:$0xff]  ;;  %v1573_v36 = vcombine.high %v640_v29, %v644_v31  ;;  %v1572_v37 = vcombine.low %v640_v29, %v644_v31  ;;  %v632_v39 = vld [vmem:[#allocation8 + $0x188] sm:$0xff]  ;;  %v641_v27 = vld [vmem:[#allocation8 + $0x1d0] sm:$0xff] }
 0x157   : > { %v635_v34 = vld [vmem:[#allocation8 + $0x1a0] sm:$0xff]  ;;  %v636_v40 = vld [vmem:[#allocation8 + $0x1a8] sm:$0xff]  ;;  %v645_v28 = vld [vmem:[#allocation8 + $0x1f0] sm:$0xff] }
 0x158   : > { %v1563_v38 = vcombine.high %v631_v33, %v635_v34  ;;  %v623_v41 = vld [vmem:[#allocation8 + $0x140] sm:$0xff]  ;;  %1009 = vmatprep.subr.bf16.mxu0 %v1571_v30  ;;  %v1565_v42 = vcombine.high %v632_v39, %v636_v40  ;;  %v624_v44 = vld [vmem:[#allocation8 + $0x148] sm:$0xff]  ;;  %1050 = vmatprep.subr.bf16.mxu1 %v1573_v36  ;;  %v1562_v46 = vcombine.low %v631_v33, %v635_v34  ;;  %v642_v30 = vld [vmem:[#allocation8 + $0x1d8] sm:$0xff] }
 0x159   : > { %v627_v43 = vld [vmem:[#allocation8 + $0x160] sm:$0xff]  ;;  %v628_v45 = vld [vmem:[#allocation8 + $0x168] sm:$0xff]  ;;  %1010 = vmatpush1.bf16.msra.mxu0 %v1570_v32  ;;  %1051 = vmatpush1.bf16.msra.mxu1 %v1572_v37  ;;  %v1564_v47 = vcombine.low %v632_v39, %v636_v40  ;;  %v646_v31 = vld [vmem:[#allocation8 + $0x1f8] sm:$0xff]  ;;  %v1575_v34 = vcombine.high %v641_v27, %v645_v28 }
 0x15a   : > { %1011 = vmatprep.subr.bf16.mxu0 %v1563_v38  ;;  %v1555_v48 = vcombine.high %v623_v41, %v627_v43  ;;  %1052 = vmatprep.subr.bf16.mxu1 %v1565_v42  ;;  %v1557_v49 = vcombine.high %v624_v44, %v628_v45  ;;  %v615_v50 = vld [vmem:[#allocation8 + $0x100] sm:$0xff]  ;;  %v616_v52 = vld [vmem:[#allocation8 + $0x108] sm:$0xff]  ;;  %v1554_v54 = vcombine.low %v623_v41, %v627_v43  ;;  %v633_v37 = vld [vmem:[#allocation8 + $0x190] sm:$0xff] }
 0x15b   : > { %v619_v51 = vld [vmem:[#allocation8 + $0x120] sm:$0xff]  ;;  %v620_v53 = vld [vmem:[#allocation8 + $0x128] sm:$0xff]  ;;  %v1556_v55 = vcombine.low %v624_v44, %v628_v45  ;;  %v1577_v36 = vcombine.high %v642_v30, %v646_v31  ;;  %v637_v38 = vld [vmem:[#allocation8 + $0x1b0] sm:$0xff]  ;;  %v1574_v42 = vcombine.low %v641_v27, %v645_v28  ;;  %v1576_v43 = vcombine.low %v642_v30, %v646_v31 }
 0x15c   : > { %v1547_v56 = vcombine.high %v615_v50, %v619_v51  ;;  %v1549_v57 = vcombine.high %v616_v52, %v620_v53  ;;  %v607_v58 = vld [vmem:[#allocation8 + $0xc0] sm:$0xff]  ;;  %v608_v60 = vld [vmem:[#allocation8 + $0xc8] sm:$0xff]  ;;  %v1546_v62 = vcombine.low %v615_v50, %v619_v51  ;;  %v1548_v63 = vcombine.low %v616_v52, %v620_v53  ;;  %v634_v40 = vld [vmem:[#allocation8 + $0x198] sm:$0xff] }
 0x15d   : > { %1012 = vmatpush1.bf16.msra.mxu0 %v1562_v46  ;;  %1053 = vmatpush1.bf16.msra.mxu1 %v1564_v47  ;;  %v611_v59 = vld [vmem:[#allocation8 + $0xe0] sm:$0xff]  ;;  %v612_v61 = vld [vmem:[#allocation8 + $0xe8] sm:$0xff]  ;;  %v638_v41 = vld [vmem:[#allocation8 + $0x1b8] sm:$0xff]  ;;  %v1567_v44 = vcombine.high %v633_v37, %v637_v38  ;;  %v1566_v50 = vcombine.low %v633_v37, %v637_v38  ;;  %v649_v31 = vlaneseq }
 0x15e   : > { %1013 = vmatprep.subr.bf16.mxu0 %v1555_v48  ;;  %1054 = vmatprep.subr.bf16.mxu1 %v1557_v49  ;;  %v1539_v0 = vcombine.high %v607_v58, %v611_v59  ;;  %v1541_v1 = vcombine.high %v608_v60, %v612_v61  ;;  %v599_v2 = vld [vmem:[#allocation8 + $0x80] sm:$0xff]  ;;  %v600_v4 = vld [vmem:[#allocation8 + $0x88] sm:$0xff]  ;;  %v1538_v6 = vcombine.low %v607_v58, %v611_v59  ;;  %v625_v46 = vld [vmem:[#allocation8 + $0x150] sm:$0xff] }
 0x15f   : > { %v603_v3 = vld [vmem:[#allocation8 + $0xa0] sm:$0xff]  ;;  %v604_v5 = vld [vmem:[#allocation8 + $0xa8] sm:$0xff]  ;;  %v1540_v7 = vcombine.low %v608_v60, %v612_v61  ;;  %v1569_v45 = vcombine.high %v634_v40, %v638_v41  ;;  %v629_v47 = vld [vmem:[#allocation8 + $0x170] sm:$0xff]  ;;  %v1568_v51 = vcombine.low %v634_v40, %v638_v41 }
 0x160   : > { %v1531_v8 = vcombine.high %v599_v2, %v603_v3  ;;  %v1533_v9 = vcombine.high %v600_v4, %v604_v5  ;;  %v591_v10 = vld [vmem:[#allocation8 + $0x40] sm:$0xff]  ;;  %v592_v12 = vld [vmem:[#allocation8 + $0x48] sm:$0xff]  ;;  %v1530_v14 = vcombine.low %v599_v2, %v603_v3  ;;  %v1532_v15 = vcombine.low %v600_v4, %v604_v5  ;;  %v626_v48 = vld [vmem:[#allocation8 + $0x158] sm:$0xff] }
 0x161   : > { %1014 = vmatpush1.bf16.msra.mxu0 %v1554_v54  ;;  %1055 = vmatpush1.bf16.msra.mxu1 %v1556_v55  ;;  %v595_v11 = vld [vmem:[#allocation8 + $0x60] sm:$0xff]  ;;  %v596_v13 = vld [vmem:[#allocation8 + $0x68] sm:$0xff]  ;;  %v630_v49 = vld [vmem:[#allocation8 + $0x178] sm:$0xff]  ;;  %v1559_v52 = vcombine.high %v625_v46, %v629_v47  ;;  %v1558_v58 = vcombine.low %v625_v46, %v629_v47 }
 0x162   : > { %1015 = vmatprep.subr.bf16.mxu0 %v1547_v56  ;;  %1056 = vmatprep.subr.bf16.mxu1 %v1549_v57  ;;  %v1523_v16 = vcombine.high %v591_v10, %v595_v11  ;;  %v1525_v17 = vcombine.high %v592_v12, %v596_v13  ;;  %v583_v18 = vld [vmem:[#allocation8] sm:$0xff]  ;;  %v584_v20 = vld [vmem:[#allocation8 + $0x8] sm:$0xff]  ;;  %v1522_v22 = vcombine.low %v591_v10, %v595_v11  ;;  %v617_v54 = vld [vmem:[#allocation8 + $0x110] sm:$0xff] }
 0x163   : > { %v587_v19 = vld [vmem:[#allocation8 + $0x20] sm:$0xff]  ;;  %v588_v21 = vld [vmem:[#allocation8 + $0x28] sm:$0xff]  ;;  %v1524_v24 = vcombine.low %v592_v12, %v596_v13  ;;  %v1561_v53 = vcombine.high %v626_v48, %v630_v49  ;;  %v621_v55 = vld [vmem:[#allocation8 + $0x130] sm:$0xff]  ;;  %v1560_v59 = vcombine.low %v626_v48, %v630_v49 }
 0x164   : > { %v580_v23 = vld [vmem:[#allocation2] sm:$0xff]  ;;  %v1515_v25 = vcombine.high %v583_v18, %v587_v19  ;;  %v1517_v26 = vcombine.high %v584_v20, %v588_v21  ;;  %v1514_v32 = vcombine.low %v583_v18, %v587_v19  ;;  %v1516_v33 = vcombine.low %v584_v20, %v588_v21  ;;  %v618_v56 = vld [vmem:[#allocation8 + $0x118] sm:$0xff]  ;;  %v601_v5 = vld [vmem:[#allocation8 + $0x90] sm:$0xff] }
 0x165   : > { %1016 = vmatpush1.bf16.msra.mxu0 %v1546_v62  ;;  %1057 = vmatpush1.bf16.msra.mxu1 %v1548_v63  ;;  %v581_v29 = vmax.f32 %v580_v23, 0.0  ;;  %v622_v57 = vld [vmem:[#allocation8 + $0x138] sm:$0xff]  ;;  %v1551_v60 = vcombine.high %v617_v54, %v621_v55  ;;  %v609_v62 = vld [vmem:[#allocation8 + $0xd0] sm:$0xff]  ;;  %v1550_v2 = vcombine.low %v617_v54, %v621_v55 }
 0x166   : > { %1017 = vmatprep.subr.bf16.mxu0 %v1539_v0  ;;  %1058 = vmatprep.subr.bf16.mxu1 %v1541_v1  ;;  %v1553_v61 = vcombine.high %v618_v56, %v622_v57  ;;  %v613_v63 = vld [vmem:[#allocation8 + $0xf0] sm:$0xff]  ;;  %v610_v0 = vld [vmem:[#allocation8 + $0xd8] sm:$0xff]  ;;  %v1552_v3 = vcombine.low %v618_v56, %v622_v57 }
 0x167   : > { %v2176_v39 = vpack.c.bf16 %v581_v29, %v581_v29  ;;  %v614_v1 = vld [vmem:[#allocation8 + $0xf8] sm:$0xff]  ;;  %v1543_v4 = vcombine.high %v609_v62, %v613_v63  ;;  %v593_v13 = vld [vmem:[#allocation8 + $0x50] sm:$0xff] }
 0x168   : > { %v1544_v10 = vcombine.low %v610_v0, %v614_v1  ;;  %v585_v21 = vld [vmem:[#allocation8 + $0x10] sm:$0xff]  ;;  %v586_v23 = vld [vmem:[#allocation8 + $0x18] sm:$0xff] }
 0x169   : > { %1018 = vmatpush1.bf16.msra.mxu0 %v1538_v6  ;;  %1059 = vmatpush1.bf16.msra.mxu1 %v1540_v7  ;;  %v605_v6 = vld [vmem:[#allocation8 + $0xb0] sm:$0xff]  ;;  %v602_v7 = vld [vmem:[#allocation8 + $0x98] sm:$0xff] }
 0x16a   : > { %1019 = vmatprep.subr.bf16.mxu0 %v1531_v8  ;;  %1060 = vmatprep.subr.bf16.mxu1 %v1533_v9  ;;  %v606_v8 = vld [vmem:[#allocation8 + $0xb8] sm:$0xff]  ;;  %v1542_v9 = vcombine.low %v609_v62, %v613_v63  ;;  %v1535_v11 = vcombine.high %v601_v5, %v605_v6 }
 0x16b   : > { %v1537_v12 = vcombine.high %v602_v7, %v606_v8  ;;  %v1536_v18 = vcombine.low %v602_v7, %v606_v8  ;;  %v1280_v8 = vand.u32 127, %v649_v31 }
 0x16d   : > { %1020 = vmatpush1.bf16.msra.mxu0 %v1530_v14  ;;  %1061 = vmatpush1.bf16.msra.mxu1 %v1532_v15  ;;  %v597_v14 = vld [vmem:[#allocation8 + $0x70] sm:$0xff]  ;;  %v594_v15 = vld [vmem:[#allocation8 + $0x58] sm:$0xff] }
 0x16e   : > { %1021 = vmatprep.subr.bf16.mxu0 %v1523_v16  ;;  %1062 = vmatprep.subr.bf16.mxu1 %v1525_v17  ;;  %v598_v16 = vld [vmem:[#allocation8 + $0x78] sm:$0xff]  ;;  %v1534_v17 = vcombine.low %v601_v5, %v605_v6  ;;  %v1527_v19 = vcombine.high %v593_v13, %v597_v14  ;;  %v2196_v5 = vld [vmem:[%s2272_s5] sm:$0xff] }
 0x16f   : > { %v1529_v20 = vcombine.high %v594_v15, %v598_v16 }
 0x171   : > { %1022 = vmatpush1.bf16.msra.mxu0 %v1522_v22  ;;  %1063 = vmatpush1.bf16.msra.mxu1 %v1524_v24  ;;  %v589_v22 = vld [vmem:[#allocation8 + $0x30] sm:$0xff]  ;;  %v590_v24 = vld [vmem:[#allocation8 + $0x38] sm:$0xff] }
 0x172   : > { %1023 = vmatprep.subr.bf16.mxu0 %v1515_v25  ;;  %1064 = vmatprep.subr.bf16.mxu1 %v1517_v26  ;;  %v1526_v25 = vcombine.low %v593_v13, %v597_v14  ;;  %v1528_v26 = vcombine.low %v594_v15, %v598_v16  ;;  %v1519_v27 = vcombine.high %v585_v21, %v589_v22 }
 0x173   : > { %v1521_v28 = vcombine.high %v586_v23, %v590_v24  ;;  %v1518_v29 = vcombine.low %v585_v21, %v589_v22  ;;  %v1520_v30 = vcombine.low %v586_v23, %v590_v24 }
 0x175   : > { %1024 = vmatpush1.bf16.msra.mxu0 %v1514_v32  ;;  %1065 = vmatpush1.bf16.msra.mxu1 %v1516_v33  ;;  %v2184_v32 = vshrl.u32 %v649_v31, 7 }
 0x176   : > { %1091 = vmatprep.subr.bf16.mxu0 %v1575_v34  ;;  %1132 = vmatprep.subr.bf16.mxu1 %v1577_v36  ;;  %v647_v34 = vld [vmem:[#allocation9] sm:$0xff] }
 0x177   : > { %v651_v33 = vsub.s32 0, %v2184_v32  ;;  %v659_v36 = vsub.s32 2, %v2184_v32  ;;  %v655_v37 = vsub.s32 1, %v2184_v32  ;;  %v663_v38 = vsub.s32 3, %v2184_v32 }
 0x178   : > { %1042 = vmatmul.mubr.bf16.vlgmr.msra.gmra.mxu0 %v2176_v39  ;;  %1083 = vmatmul.mubr.bf16.vlgmr.msra.gmra.mxu1 %v2176_v39  ;;  %v679_v6 = vsub.s32 7, %v2184_v32 }
 0x179   : > { %1092 = vmatpush1.bf16.msra.mxu0 %v1574_v42  ;;  %1133 = vmatpush1.bf16.msra.mxu1 %v1576_v43  ;;  %v652_v40 = vrot.slane %v647_v34, %v651_v33  ;;  %v660_v41 = vrot.slane %v647_v34, %v659_v36  ;;  %v656_v42 = vrot.slane %v647_v34, %v655_v37 }
 0x17a   : > { %1093 = vmatprep.subr.bf16.mxu0 %v1567_v44  ;;  %1134 = vmatprep.subr.bf16.mxu1 %v1569_v45  ;;  %v664_v44 = vrot.slane %v647_v34, %v663_v38  ;;  %v680_v14 = vrot.slane %v647_v34, %v679_v6  ;;  %v1230_v15 = vrot.slane %v2196_v5, %v655_v37 }
 0x17b   : > { %1123 = vmatprep.mubr.bf16.mxu0 %v1969_v35  ;;  %1164 = vmatprep.mubr.bf16.mxu1 %v1969_v35  ;;  %v1545_v35 = vcombine.high %v610_v0, %v614_v1 }
 0x17d   : > { %1094 = vmatpush1.bf16.msra.mxu0 %v1566_v50  ;;  %1135 = vmatpush1.bf16.msra.mxu1 %v1568_v51 }
 0x17e   : > { %1095 = vmatprep.subr.bf16.mxu0 %v1559_v52  ;;  %1136 = vmatprep.subr.bf16.mxu1 %v1561_v53 }
 0x181   : > { %1096 = vmatpush1.bf16.msra.mxu0 %v1558_v58  ;;  %1137 = vmatpush1.bf16.msra.mxu1 %v1560_v59 }
 0x182   : > { %1097 = vmatprep.subr.bf16.mxu0 %v1551_v60  ;;  %1138 = vmatprep.subr.bf16.mxu1 %v1553_v61 }
 0x185   : > { %1098 = vmatpush1.bf16.msra.mxu0 %v1550_v2  ;;  %1139 = vmatpush1.bf16.msra.mxu1 %v1552_v3  ;;  %v667_v3 = vsub.s32 4, %v2184_v32 }
 0x186   : > { %1099 = vmatprep.subr.bf16.mxu0 %v1543_v4  ;;  %1140 = vmatprep.subr.bf16.mxu1 %v1545_v35  ;;  %v675_v4 = vsub.s32 6, %v2184_v32  ;;  %v671_v35 = vsub.s32 5, %v2184_v32 }
 0x187   : > { %v668_v7 = vrot.slane %v647_v34, %v667_v3 }
 0x189   : > { %1100 = vmatpush1.bf16.msra.mxu0 %v1542_v9  ;;  %1141 = vmatpush1.bf16.msra.mxu1 %v1544_v10  ;;  %v676_v9 = vrot.slane %v647_v34, %v675_v4  ;;  %v1226_v10 = vrot.slane %v2196_v5, %v651_v33 }
 0x18a   : > { %1101 = vmatprep.subr.bf16.mxu0 %v1535_v11  ;;  %1142 = vmatprep.subr.bf16.mxu1 %v1537_v12  ;;  %v672_v11 = vrot.slane %v647_v34, %v671_v35  ;;  %v1234_v12 = vrot.slane %v2196_v5, %v659_v36 }
 0x18d   : > { %1102 = vmatpush1.bf16.msra.mxu0 %v1534_v17  ;;  %1143 = vmatpush1.bf16.msra.mxu1 %v1536_v18  ;;  %v2210_v18 = vadd.s32 384, %v1280_v8 }
 0x18e   : > { %1103 = vmatprep.subr.bf16.mxu0 %v1527_v19  ;;  %1144 = vmatprep.subr.bf16.mxu1 %v1529_v20  ;;  %v1238_v20 = vrot.slane %v2196_v5, %v663_v38 }
 0x18f   : > { %vm1287_vm0 = vcmp.lt.s32.totalorder %v2210_v18, 468 }
 0x191   : > { %1104 = vmatpush1.bf16.msra.mxu0 %v1526_v25  ;;  %1145 = vmatpush1.bf16.msra.mxu1 %v1528_v26 }
 0x192   : > { %1105 = vmatprep.subr.bf16.mxu0 %v1519_v27  ;;  %1146 = vmatprep.subr.bf16.mxu1 %v1521_v28 }
 0x195   : > { %1106 = vmatpush1.bf16.msra.mxu0 %v1518_v29  ;;  %1147 = vmatpush1.bf16.msra.mxu1 %v1520_v30 }
 0x198   : > { %1124 = vmatmul.mubr.bf16.vlgmr.msra.gmra.mxu0 %v2176_v39  ;;  %1165 = vmatmul.mubr.bf16.vlgmr.msra.gmra.mxu1 %v2176_v39 }
 0x238   : > { %v1043_v43 = vpop.f32.mrf.mxu0  ;;  %v1084_v46 = vpop.f32.mrf.mxu1 }
 0x239   : > { %v1044_v45 = vadd.f32 %v1043_v43, %v652_v40  ;;  %v1085_v39 = vadd.f32 %v1084_v46, %v660_v41 }
 0x23a   : > { %v1045_v47 = vpop.f32.mrf.mxu0  ;;  %v1086_v50 = vpop.f32.mrf.mxu1 }
 0x23b   : > { %v1578_v48 = vmul.f32 -1.442695, %v1044_v45  ;;  %v1046_v49 = vadd.f32 %v1045_v47, %v656_v42  ;;  %v1580_v51 = vmul.f32 -1.442695, %v1085_v39  ;;  %v1087_v52 = vadd.f32 %v1086_v50, %v664_v44 }
 0x23c   : > { %v1047_v53 = vpop.f32.mrf.mxu0  ;;  %v1088_v55 = vpop.f32.mrf.mxu1 }
 0x23d   : > { %1729 = vpow2.f32 %v1578_v48  ;;  %v1579_v54 = vmul.f32 -1.442695, %v1046_v49  ;;  %v1581_v56 = vmul.f32 -1.442695, %v1087_v52 }
 0x23e   : > { %1731 = vpow2.f32 %v1580_v51  ;;  %v1048_v57 = vpop.f32.mrf.mxu0  ;;  %v1089_v58 = vpop.f32.mrf.mxu1 }
 0x23f   : > { %1733 = vpow2.f32 %v1579_v54 }
 0x240   : > { %1735 = vpow2.f32 %v1581_v56 }
 0x24a   : > { %v1730_v59 = vpop.eup %1729 }
 0x24b   : > { %v1732_v60 = vpop.eup %1731  ;;  %v1197_v61 = vadd.f32 1.0, %v1730_v59  ;;  %v1242_v59 = vrot.slane %v2196_v5, %v667_v3 }
 0x24c   : > { %v1734_v62 = vpop.eup %1733  ;;  %v1199_v63 = vadd.f32 1.0, %v1732_v60  ;;  %v1250_v60 = vrot.slane %v2196_v5, %v675_v4 }
 0x24d   : > { %v1736_v0 = vpop.eup %1735  ;;  %1737 = vrcp.f32 %v1197_v61  ;;  %v1198_v1 = vadd.f32 1.0, %v1734_v62  ;;  %v1246_v61 = vrot.slane %v2196_v5, %v671_v35 }
 0x24e   : > { %1739 = vrcp.f32 %v1199_v63  ;;  %v1200_v2 = vadd.f32 1.0, %v1736_v0  ;;  %v1254_v63 = vrot.slane %v2196_v5, %v679_v6 }
 0x24f   : > { %1741 = vrcp.f32 %v1198_v1 }
 0x250   : > { %1743 = vrcp.f32 %v1200_v2 }
 0x258   : > { %v1125_v13 = vpop.f32.mrf.mxu0  ;;  %v1166_v17 = vpop.f32.mrf.mxu1 }
 0x259   : > { %v1126_v16 = vadd.f32 %v1125_v13, %v668_v7  ;;  %v1167_v21 = vadd.f32 %v1166_v17, %v676_v9 }
 0x25a   : > { %v1738_v19 = vpop.eup %1737  ;;  %v1127_v22 = vpop.f32.mrf.mxu0 }
 0x25b   : > { %v1740_v23 = vpop.eup %1739  ;;  %v1582_v24 = vmul.f32 -1.442695, %v1126_v16  ;;  %v1128_v25 = vadd.f32 %v1127_v22, %v672_v11  ;;  %v1168_v26 = vpop.f32.mrf.mxu1  ;;  %v1263_v27 = vmul.f32 %v1738_v19, %v1226_v10  ;;  %v1584_v29 = vmul.f32 -1.442695, %v1167_v21 }
 0x25c   : > { %v1742_v28 = vpop.eup %1741  ;;  %v1169_v30 = vadd.f32 %v1168_v26, %v680_v14  ;;  %v1129_v31 = vpop.f32.mrf.mxu0  ;;  %v1265_v33 = vmul.f32 %v1740_v23, %v1234_v12 }
 0x25d   : > { %v1744_v34 = vpop.eup %1743  ;;  %1745 = vpow2.f32 %v1582_v24  ;;  %v1583_v36 = vmul.f32 -1.442695, %v1128_v25  ;;  %v1170_v37 = vpop.f32.mrf.mxu1  ;;  %v1264_v40 = vmul.f32 %v1742_v28, %v1230_v15  ;;  %1271 = vst [vmem:[#allocation11] sm:$0xff] %v1263_v27 }
 0x25e   : > { %1747 = vpow2.f32 %v1584_v29  ;;  %v1585_v38 = vmul.f32 -1.442695, %v1169_v30  ;;  %v1130_v41 = vpop.f32.mrf.mxu0  ;;  %v1266_v42 = vmul.f32 %v1744_v34, %v1238_v20  ;;  %1273 = vst [vmem:[#allocation11 + $0x10] sm:$0xff] %v1265_v33 }
 0x25f   : > { %1749 = vpow2.f32 %v1583_v36  ;;  %v1171_v43 = vpop.f32.mrf.mxu1  ;;  %1272 = vst [vmem:[#allocation11 + $0x8] sm:$0xff] %v1264_v40  ;;  %v1310_v44 = vmax.f32 %v1263_v27, %v1264_v40  ;;  %v1292_v45 = vmin.f32 %v1263_v27, %v1264_v40 }
 0x260   : > { %1751 = vpow2.f32 %v1585_v38  ;;  %1274 = vst [vmem:[#allocation11 + $0x18] sm:$0xff] %v1266_v42  ;;  %v1309_v46 = vsel %vm1287_vm0, %v1266_v42, -inf  ;;  %v1291_v39 = vsel %vm1287_vm0, %v1266_v42, inf }
 0x261   : > { %v1311_v47 = vmax.f32 %v1265_v33, %v1309_v46  ;;  %v1293_v48 = vmin.f32 %v1265_v33, %v1291_v39 }
 0x263   : > { %v1312_v49 = vmax.f32 %v1310_v44, %v1311_v47  ;;  %v1294_v50 = vmin.f32 %v1292_v45, %v1293_v48 }
 0x265   : > { %1313 = vmax.xlane.f32.xlu1 %v1312_v49  ;;  %1295 = vmin.xlane.f32.xlu0 %v1294_v50 }
 0x26a   : > { %v1746_v51 = vpop.eup %1745 }
 0x26b   : > { %v1748_v52 = vpop.eup %1747  ;;  %v1201_v53 = vadd.f32 1.0, %v1746_v51 }
 0x26c   : > { %v1750_v54 = vpop.eup %1749  ;;  %v1203_v55 = vadd.f32 1.0, %v1748_v52 }
 0x26d   : > { %v1752_v56 = vpop.eup %1751  ;;  %1753 = vrcp.f32 %v1201_v53  ;;  %v1202_v57 = vadd.f32 1.0, %v1750_v54 }
 0x26e   : > { %1755 = vrcp.f32 %v1203_v55  ;;  %v1204_v58 = vadd.f32 1.0, %v1752_v56 }
 0x26f   : > { %1757 = vrcp.f32 %v1202_v57 }
 0x270   : > { %1759 = vrcp.f32 %v1204_v58 }
 0x27a   : > { %v1754_v62 = vpop.eup %1753 }
 0x27b   : > { %v1756_v0 = vpop.eup %1755  ;;  %v1267_v1 = vmul.f32 %v1754_v62, %v1242_v59 }
 0x27c   : > { %v1758_v2 = vpop.eup %1757  ;;  %v1269_v7 = vmul.f32 %v1756_v0, %v1250_v60 }
 0x27d   : > { %v1760_v8 = vpop.eup %1759  ;;  %v1268_v9 = vmul.f32 %v1758_v2, %v1246_v61  ;;  %1275 = vst [vmem:[#allocation11 + $0x20] sm:$0xff] %v1267_v1 }
 0x27e   : > { %v1270_v3 = vmul.f32 %v1760_v8, %v1254_v63  ;;  %1277 = vst [vmem:[#allocation11 + $0x30] sm:$0xff] %v1269_v7 }
 0x27f   : > { %1276 = vst [vmem:[#allocation11 + $0x28] sm:$0xff] %v1268_v9  ;;  %v1319_v4 = vmax.f32 %v1267_v1, %v1268_v9  ;;  %v1301_v10 = vmin.f32 %v1267_v1, %v1268_v9 }
 0x280   : > { %1278 = vst [vmem:[#allocation11 + $0x38] sm:$0xff] %v1270_v3  ;;  %v1318_v35 = vsel %vm1287_vm0, %v1270_v3, -inf  ;;  %v1300_v32 = vsel %vm1287_vm0, %v1270_v3, inf }
 0x281   : > { %v1320_v5 = vmax.f32 %v1269_v7, %v1318_v35  ;;  %v1302_v6 = vmin.f32 %v1269_v7, %v1300_v32 }
 0x283   : > { %v1321_v11 = vmax.f32 %v1319_v4, %v1320_v5  ;;  %v1303_v12 = vmin.f32 %v1301_v10, %v1302_v6 }
 0x285   : > { %1322 = vmax.xlane.f32.xlu1 %v1321_v11  ;;  %1304 = vmin.xlane.f32.xlu0 %v1303_v12 }
 0x2ee   : > { %v1296_v13 = vpop.xlane.xlu0 %1295  ;;  %v1314_v14 = vpop.xlane.xlu1 %1313 }
 0x30e   : > { %v1305_v15 = vpop.xlane.xlu0 %1304  ;;  %v1323_v17 = vpop.xlane.xlu1 %1322 }
 0x30f   : > { %v1325_v16 = vsel %vm1324_vm1, %v1296_v13, %v1305_v15 }
 0x310   : > { %v1327_v19 = vsel %vm1326_vm2, %v1325_v16, %v1314_v14 }
 0x311   : > { %v1329_v20 = vsel %vm1328_vm3, %v1327_v19, %v1323_v17 }
 0x312   : > { %v1617_v21 = vcvt.f32.s32 %v1329_v20 }
 0x314   : > { %1332 = vst.msk [vmem:[%s2274_s7] sm:$0xff] %vm1331_vm4, %v1617_v21 }
 0x315 PF: > { %p1653_p13 = scmp.eq.s32.totalorder %s2040_s30, 2  ;;  %s1970_s12 = smov [#allocation11]  }
 0x316   : > { %s1347_s24 = sshll.u32 %s1970_s12, 4  ;;  %s1348_s24 = int_to_ptr.vmem [resolvable:$true] %s1347_s24 }
 0x317   : > { %s1869_s13 = scalar_lea.vmem %s1348_s24, 1024  ;;  %p1876_p9 = scmp.lt.s32.totalorder %s1348_s24, %s1348_s24 }
 0x318   : > { %p1870_p0 = scmp.ne.s32.totalorder %s1348_s24, %s1869_s13  ;;  %p1877_p10 = scmp.lt.s32.totalorder %s1869_s13, %s1869_s13 }
 0x31a   : > { %p1871_p2 = pnand %p1870_p0, %p1653_p13  ;;  %p1878_p12 = por %p1877_p10, %p1876_p9 }
 0x31c   : > { %p1872_p3 = pneg %p1871_p2 }
 0x31e   : > { %p1879_p11 = pnand %p1878_p12, %p1872_p3 }
 0x320   : > { %1882 = shalt.err (!%p1879_p11)
}
 0x321   : > { %1631 = dma.vmem_to_hbm [thread:$0]  (%p1653_p13), %s1348_s24, 1024, %s2273_s6, [#allocation5]  }
 0x322   : > { %1934 = dma.done.wait (%p1653_p13), [#allocation5], 1024  }
 0x323   : > { %1936 = vsyncadd (%p1653_p13), [#allocation5], 4294966272 }
 0x324 PF: > { %s26_s29 = sadd.s32 1, %s1959_s29   ;;  %s2292_s0 = sld [smem:[#allocation17_spill]] }
 0x325   : > { %p23_p5 = scmp.ge.s32.totalorder %s26_s29, 5   ;;  %s2293_s24 = smov %s1943_s25 }
 0x326   : > { %s2294_s25 = smov %s1947_s26  ;;  %s2295_s26 = smov %s2098_s14 }
 0x327   : > { %s2296_s27 = smov %s1955_s28  ;;  %25 = sbr.rel (!%p23_p5) target bundleno = 12 (0xc), region = 123 }
 0x32a   : > { %s2297_s28 = smov %s2292_s0 }
 0x32c   :  { %1370 = vsyncpa [#allocation4], 1 }
 0x32d   :  { %1372 = vsyncpa [#allocation4 + $0x1], 1 }
 0x32e   :  { %1373 = vsyncpa [#allocation7], 1 }
 0x32f   :  { %1375 = vsyncpa [#allocation7 + $0x1], 1 }
 0x330   :  { %1376 = vsyncpa [#allocation10], 1 }
 0x331   :  { %1377 = vsyncpa [#allocation5], 1 }
 0x332   :  { %1379 = vsyncpa [#allocation5 + $0x1], 1 }

</bundles_post_ra>
